<compile_context>
chip_gen: v5e
topology: v5e:2x2
jax: 0.10.0
libtpu: 0.0.40
codegen_flags: <defaults>
</compile_context>

<pallas_src>
import functools

import jax
import jax.numpy as jnp
from jax import lax
from jax.experimental import pallas as pl
from jax.experimental.pallas import tpu as pltpu

THETA0 = 3  # morphological (max/min pool) window, stride 1, pad theta0 // 2
THETA = 5   # mean (box) filter window, stride 1, pad theta // 2


def _window_pass(x, dst_ref, op, radius, axis):
    """Stride-1 'same' sliding-window reduce of width 2*radius+1 along `axis`
    (-1 = W/lanes, -2 = H/sublanes).  Out-of-range taps are simply skipped,
    which matches PyTorch's implicit -inf (max pool), +inf (min pool via
    -maxpool(-x)) and 0 (conv2d) padding.  Implemented as shifted
    slice-accumulates into a VMEM scratch: only elementwise ops and static ref
    slices, no band matrices / concatenations / padded HBM copies."""
    n = x.shape[axis]
    dst_ref[...] = x  # center tap (s == 0)
    for s in range(1, radius + 1):
        if axis == -1:
            dst_ref[:, :, : n - s] = op(dst_ref[:, :, : n - s], x[:, :, s:])
            dst_ref[:, :, s:] = op(dst_ref[:, :, s:], x[:, :, : n - s])
        else:  # axis == -2
            dst_ref[:, : n - s, :] = op(dst_ref[:, : n - s, :], x[:, s:, :])
            dst_ref[:, s:, :] = op(dst_ref[:, s:, :], x[:, : n - s, :])
    return dst_ref[...]


def _boundary_loss_kernel(pred_ref, target_ref, out_ref, tmp_a, tmp_b, *,
                          theta0, theta):
    pred = pred_ref[...]      # (bt, H, W) f32 logits
    target = target_ref[...]  # (bt, H, W) f32 mask
    p0 = theta0 // 2
    ph = theta // 2

    # ---- morphological gradient (separable dilation / erosion) --------------
    # Independent scratch buffers so the max and min chains can interleave.
    dil = _window_pass(target, tmp_a, jnp.maximum, p0, axis=-1)
    ero = _window_pass(target, tmp_b, jnp.minimum, p0, axis=-1)
    dil = _window_pass(dil, tmp_a, jnp.maximum, p0, axis=-2)
    ero = _window_pass(ero, tmp_b, jnp.minimum, p0, axis=-2)
    boundary = dil - ero

    # ---- theta x theta mean (box) filter, separable, zero padding -----------
    blur = _window_pass(boundary, tmp_a, jnp.add, ph, axis=-1)
    blur = _window_pass(blur, tmp_b, jnp.add, ph, axis=-2)
    weight_map = 1.0 + (10.0 / float(theta * theta)) * blur

    # ---- binary cross entropy with logits (stable form) ---------------------
    bce = (jnp.maximum(pred, 0.0) - pred * target
           + jnp.log(1.0 + jnp.exp(-jnp.abs(pred))))

    # per-tile partial sum, lane-broadcast into the (1, 1, 128) output block
    out_ref[...] = jnp.broadcast_to(jnp.sum(weight_map * bce), out_ref.shape)


def _pick_batch_block(B, H, W):
    """Largest divisor of B whose (bt, H, W) working set stays well inside the
    scoped VMEM budget, while keeping a few grid steps for DMA/compute overlap
    (and so both megacore TensorCores get work along the 'parallel' axis)."""
    try:
        vmem_cap = int(pltpu.get_tpu_info().vmem_capacity_bytes)
    except Exception:
        vmem_cap = 64 * 1024 * 1024  # v7x physical; conservative everywhere
    h_pad = -(-H // 8) * 8
    w_pad = -(-W // 128) * 128
    # ~16 sublane/lane-padded f32 planes live per batch slice:
    # 2 inputs x 2 pipeline buffers + 2 scratch + ~10 value temporaries.
    per_slice = 16 * h_pad * w_pad * 4
    budget = min(vmem_cap // 8, 8 * 1024 * 1024)
    bt_cap = max(1, budget // per_slice)
    bt_cap = min(bt_cap, max(1, -(-B // 4)))  # prefer >= ~4 grid steps
    bt = 1
    for d in range(1, B + 1):
        if B % d == 0 and d <= bt_cap:
            bt = d
    return bt


def boundary_loss_pallas(pred, target, theta0=THETA0, theta=THETA):
    """Weighted-BCE boundary loss; pred / target are NCHW float32 logits / mask."""
    N, C, H, W = pred.shape
    B = N * C
    pred3 = pred.reshape(B, H, W).astype(jnp.float32)
    target3 = target.reshape(B, H, W).astype(jnp.float32)

    bt = _pick_batch_block(B, H, W)
    nbt = B // bt
    # TODO(synk): for very large H the (bt, H, W) block should additionally be
    # tiled over H with a (theta0//2 + theta//2)-row halo; not needed at these sizes.

    kernel = functools.partial(_boundary_loss_kernel, theta0=theta0, theta=theta)
    partials = pl.pallas_call(
        kernel,
        out_shape=jax.ShapeDtypeStruct((nbt, 1, 128), jnp.float32),
        grid=(nbt,),
        in_specs=[pl.BlockSpec((bt, H, W), lambda i: (i, 0, 0)),
                  pl.BlockSpec((bt, H, W), lambda i: (i, 0, 0))],
        out_specs=pl.BlockSpec((1, 1, 128), lambda i: (i, 0, 0)),
        scratch_shapes=[pltpu.VMEM((bt, H, W), jnp.float32),
                        pltpu.VMEM((bt, H, W), jnp.float32)],
        compiler_params=pltpu.CompilerParams(
            dimension_semantics=("parallel",),
            vmem_limit_bytes=32 * 1024 * 1024),
    )(pred3, target3)

    return jnp.sum(partials[:, 0, 0]) / float(B * H * W)


def boundary_loss_ref(pred, target, theta0=THETA0, theta=THETA):
    """Pure-JAX reference mirroring the PyTorch forward (validation only)."""
    p0 = theta0 // 2
    window = (1, 1, theta0, theta0)
    strides = (1, 1, 1, 1)
    pad = ((0, 0), (0, 0), (p0, p0), (p0, p0))
    dilated = lax.reduce_window(target, -jnp.inf, lax.max, window, strides, pad)
    eroded = -lax.reduce_window(-target, -jnp.inf, lax.max, window, strides, pad)
    boundary = dilated - eroded
    C = target.shape[1]
    k = jnp.ones((C, 1, theta, theta), jnp.float32) / float(theta * theta)
    p = theta // 2
    blur = lax.conv_general_dilated(
        boundary, k, (1, 1), ((p, p), (p, p)),
        dimension_numbers=('NCHW', 'OIHW', 'NCHW'), feature_group_count=C)
    weight_map = 1.0 + 10.0 * blur
    bce = (jnp.maximum(pred, 0.0) - pred * target
           + jnp.log(1.0 + jnp.exp(-jnp.abs(pred))))
    return jnp.mean(weight_map * bce)


if __name__ == "__main__":
    key = jax.random.PRNGKey(0)
    kp, kt = jax.random.split(key)
    # C = 1: the original module's grouped conv (weight (1,1,theta,theta),
    # groups=C) is only valid for a single-channel target.
    N, C, H, W = 8, 1, 16, 16
    pred = jax.random.normal(kp, (N, C, H, W), dtype=jnp.float32)
    target = (jax.random.uniform(kt, (N, C, H, W)) > 0.5).astype(jnp.float32)

    loss = jax.jit(boundary_loss_pallas)(pred, target)
    loss = jax.block_until_ready(loss)

    ref = boundary_loss_ref(pred, target)
    assert bool(jnp.isfinite(loss)), loss
    assert jnp.allclose(loss, ref, rtol=1e-3, atol=1e-4), (loss, ref)
    print("KERNEL_OK")
</pallas_src>

<mosaic_0001>
module attributes {stable_mosaic.version = 11 : i64} {
  func.func @_boundary_loss_kernel(%arg0: i32, %arg1: memref<2x16x16xf32, #tpu.memory_space<vmem>>, %arg2: memref<2x16x16xf32, #tpu.memory_space<vmem>>, %arg3: memref<1x1x128xf32, #tpu.memory_space<vmem>>, %arg4: memref<2x16x16xf32, #tpu.memory_space<vmem>>, %arg5: memref<2x16x16xf32, #tpu.memory_space<vmem>>) attributes {dimension_semantics = [#tpu.dimension_semantics<parallel>], iteration_bounds = array<i64: 4>, scalar_prefetch = 0 : i64, scratch_operands = 2 : i64, tpu.core_type = #tpu.core_type<tc>, window_params = [{transform_indices = @transform_0, window_bounds = array<i64: 2, 16, 16>}, {transform_indices = @transform_1, window_bounds = array<i64: 2, 16, 16>}, {transform_indices = @transform_2, window_bounds = array<i64: 1, 1, 128>}]} {
    %c0 = arith.constant 0 : index
    %c0_0 = arith.constant 0 : index
    %c0_1 = arith.constant 0 : index
    %0 = vector.load %arg1[%c0, %c0_0, %c0_1] : memref<2x16x16xf32, #tpu.memory_space<vmem>>, vector<2x16x16xf32>
    %c0_2 = arith.constant 0 : index
    %c0_3 = arith.constant 0 : index
    %c0_4 = arith.constant 0 : index
    %1 = vector.load %arg2[%c0_2, %c0_3, %c0_4] : memref<2x16x16xf32, #tpu.memory_space<vmem>>, vector<2x16x16xf32>
    %c0_5 = arith.constant 0 : index
    %c0_6 = arith.constant 0 : index
    %c0_7 = arith.constant 0 : index
    %2 = vector.load %arg4[%c0_5, %c0_6, %c0_7] : memref<2x16x16xf32, #tpu.memory_space<vmem>>, vector<2x16x16xf32>
    tpu.vector_store %arg4[%c0_5, %c0_6, %c0_7], %1 {strides = array<i32>} : memref<2x16x16xf32, #tpu.memory_space<vmem>>, vector<2x16x16xf32>,
    %c0_8 = arith.constant 0 : index
    %c0_9 = arith.constant 0 : index
    %c0_10 = arith.constant 0 : index
    %3 = vector.load %arg4[%c0_8, %c0_9, %c0_10] : memref<2x16x16xf32, #tpu.memory_space<vmem>>, vector<2x16x15xf32>
    %4 = vector.extract_strided_slice %1 {offsets = [0, 0, 1], sizes = [2, 16, 15], strides = [1, 1, 1]} : vector<2x16x16xf32> to vector<2x16x15xf32>
    %5 = arith.maximumf %3, %4 : vector<2x16x15xf32>
    %c0_11 = arith.constant 0 : index
    %c0_12 = arith.constant 0 : index
    %c0_13 = arith.constant 0 : index
    %6 = vector.load %arg4[%c0_11, %c0_12, %c0_13] : memref<2x16x16xf32, #tpu.memory_space<vmem>>, vector<2x16x15xf32>
    tpu.vector_store %arg4[%c0_11, %c0_12, %c0_13], %5 {strides = array<i32>} : memref<2x16x16xf32, #tpu.memory_space<vmem>>, vector<2x16x15xf32>,
    %c0_14 = arith.constant 0 : index
    %c0_15 = arith.constant 0 : index
    %c1 = arith.constant 1 : index
    %7 = vector.load %arg4[%c0_14, %c0_15, %c1] : memref<2x16x16xf32, #tpu.memory_space<vmem>>, vector<2x16x15xf32>
    %8 = vector.extract_strided_slice %1 {offsets = [0, 0, 0], sizes = [2, 16, 15], strides = [1, 1, 1]} : vector<2x16x16xf32> to vector<2x16x15xf32>
    %9 = arith.maximumf %7, %8 : vector<2x16x15xf32>
    %c0_16 = arith.constant 0 : index
    %c0_17 = arith.constant 0 : index
    %c1_18 = arith.constant 1 : index
    %10 = vector.load %arg4[%c0_16, %c0_17, %c1_18] : memref<2x16x16xf32, #tpu.memory_space<vmem>>, vector<2x16x15xf32>
    tpu.vector_store %arg4[%c0_16, %c0_17, %c1_18], %9 {strides = array<i32>} : memref<2x16x16xf32, #tpu.memory_space<vmem>>, vector<2x16x15xf32>,
    %c0_19 = arith.constant 0 : index
    %c0_20 = arith.constant 0 : index
    %c0_21 = arith.constant 0 : index
    %11 = vector.load %arg4[%c0_19, %c0_20, %c0_21] : memref<2x16x16xf32, #tpu.memory_space<vmem>>, vector<2x16x16xf32>
    %c0_22 = arith.constant 0 : index
    %c0_23 = arith.constant 0 : index
    %c0_24 = arith.constant 0 : index
    %12 = vector.load %arg5[%c0_22, %c0_23, %c0_24] : memref<2x16x16xf32, #tpu.memory_space<vmem>>, vector<2x16x16xf32>
    tpu.vector_store %arg5[%c0_22, %c0_23, %c0_24], %1 {strides = array<i32>} : memref<2x16x16xf32, #tpu.memory_space<vmem>>, vector<2x16x16xf32>,
    %c0_25 = arith.constant 0 : index
    %c0_26 = arith.constant 0 : index
    %c0_27 = arith.constant 0 : index
    %13 = vector.load %arg5[%c0_25, %c0_26, %c0_27] : memref<2x16x16xf32, #tpu.memory_space<vmem>>, vector<2x16x15xf32>
    %14 = vector.extract_strided_slice %1 {offsets = [0, 0, 1], sizes = [2, 16, 15], strides = [1, 1, 1]} : vector<2x16x16xf32> to vector<2x16x15xf32>
    %15 = arith.minimumf %13, %14 : vector<2x16x15xf32>
    %c0_28 = arith.constant 0 : index
    %c0_29 = arith.constant 0 : index
    %c0_30 = arith.constant 0 : index
    %16 = vector.load %arg5[%c0_28, %c0_29, %c0_30] : memref<2x16x16xf32, #tpu.memory_space<vmem>>, vector<2x16x15xf32>
    tpu.vector_store %arg5[%c0_28, %c0_29, %c0_30], %15 {strides = array<i32>} : memref<2x16x16xf32, #tpu.memory_space<vmem>>, vector<2x16x15xf32>,
    %c0_31 = arith.constant 0 : index
    %c0_32 = arith.constant 0 : index
    %c1_33 = arith.constant 1 : index
    %17 = vector.load %arg5[%c0_31, %c0_32, %c1_33] : memref<2x16x16xf32, #tpu.memory_space<vmem>>, vector<2x16x15xf32>
    %18 = vector.extract_strided_slice %1 {offsets = [0, 0, 0], sizes = [2, 16, 15], strides = [1, 1, 1]} : vector<2x16x16xf32> to vector<2x16x15xf32>
    %19 = arith.minimumf %17, %18 : vector<2x16x15xf32>
    %c0_34 = arith.constant 0 : index
    %c0_35 = arith.constant 0 : index
    %c1_36 = arith.constant 1 : index
    %20 = vector.load %arg5[%c0_34, %c0_35, %c1_36] : memref<2x16x16xf32, #tpu.memory_space<vmem>>, vector<2x16x15xf32>
    tpu.vector_store %arg5[%c0_34, %c0_35, %c1_36], %19 {strides = array<i32>} : memref<2x16x16xf32, #tpu.memory_space<vmem>>, vector<2x16x15xf32>,
    %c0_37 = arith.constant 0 : index
    %c0_38 = arith.constant 0 : index
    %c0_39 = arith.constant 0 : index
    %21 = vector.load %arg5[%c0_37, %c0_38, %c0_39] : memref<2x16x16xf32, #tpu.memory_space<vmem>>, vector<2x16x16xf32>
    %c0_40 = arith.constant 0 : index
    %c0_41 = arith.constant 0 : index
    %c0_42 = arith.constant 0 : index
    %22 = vector.load %arg4[%c0_40, %c0_41, %c0_42] : memref<2x16x16xf32, #tpu.memory_space<vmem>>, vector<2x16x16xf32>
    tpu.vector_store %arg4[%c0_40, %c0_41, %c0_42], %11 {strides = array<i32>} : memref<2x16x16xf32, #tpu.memory_space<vmem>>, vector<2x16x16xf32>,
    %c0_43 = arith.constant 0 : index
    %c0_44 = arith.constant 0 : index
    %c0_45 = arith.constant 0 : index
    %23 = vector.load %arg4[%c0_43, %c0_44, %c0_45] : memref<2x16x16xf32, #tpu.memory_space<vmem>>, vector<2x15x16xf32>
    %24 = vector.extract_strided_slice %11 {offsets = [0, 1, 0], sizes = [2, 15, 16], strides = [1, 1, 1]} : vector<2x16x16xf32> to vector<2x15x16xf32>
    %25 = arith.maximumf %23, %24 : vector<2x15x16xf32>
    %c0_46 = arith.constant 0 : index
    %c0_47 = arith.constant 0 : index
    %c0_48 = arith.constant 0 : index
    %26 = vector.load %arg4[%c0_46, %c0_47, %c0_48] : memref<2x16x16xf32, #tpu.memory_space<vmem>>, vector<2x15x16xf32>
    tpu.vector_store %arg4[%c0_46, %c0_47, %c0_48], %25 {strides = array<i32>} : memref<2x16x16xf32, #tpu.memory_space<vmem>>, vector<2x15x16xf32>,
    %c0_49 = arith.constant 0 : index
    %c1_50 = arith.constant 1 : index
    %c0_51 = arith.constant 0 : index
    %27 = vector.load %arg4[%c0_49, %c1_50, %c0_51] : memref<2x16x16xf32, #tpu.memory_space<vmem>>, vector<2x15x16xf32>
    %28 = vector.extract_strided_slice %11 {offsets = [0, 0, 0], sizes = [2, 15, 16], strides = [1, 1, 1]} : vector<2x16x16xf32> to vector<2x15x16xf32>
    %29 = arith.maximumf %27, %28 : vector<2x15x16xf32>
    %c0_52 = arith.constant 0 : index
    %c1_53 = arith.constant 1 : index
    %c0_54 = arith.constant 0 : index
    %30 = vector.load %arg4[%c0_52, %c1_53, %c0_54] : memref<2x16x16xf32, #tpu.memory_space<vmem>>, vector<2x15x16xf32>
    tpu.vector_store %arg4[%c0_52, %c1_53, %c0_54], %29 {strides = array<i32>} : memref<2x16x16xf32, #tpu.memory_space<vmem>>, vector<2x15x16xf32>,
    %c0_55 = arith.constant 0 : index
    %c0_56 = arith.constant 0 : index
    %c0_57 = arith.constant 0 : index
    %31 = vector.load %arg4[%c0_55, %c0_56, %c0_57] : memref<2x16x16xf32, #tpu.memory_space<vmem>>, vector<2x16x16xf32>
    %c0_58 = arith.constant 0 : index
    %c0_59 = arith.constant 0 : index
    %c0_60 = arith.constant 0 : index
    %32 = vector.load %arg5[%c0_58, %c0_59, %c0_60] : memref<2x16x16xf32, #tpu.memory_space<vmem>>, vector<2x16x16xf32>
    tpu.vector_store %arg5[%c0_58, %c0_59, %c0_60], %21 {strides = array<i32>} : memref<2x16x16xf32, #tpu.memory_space<vmem>>, vector<2x16x16xf32>,
    %c0_61 = arith.constant 0 : index
    %c0_62 = arith.constant 0 : index
    %c0_63 = arith.constant 0 : index
    %33 = vector.load %arg5[%c0_61, %c0_62, %c0_63] : memref<2x16x16xf32, #tpu.memory_space<vmem>>, vector<2x15x16xf32>
    %34 = vector.extract_strided_slice %21 {offsets = [0, 1, 0], sizes = [2, 15, 16], strides = [1, 1, 1]} : vector<2x16x16xf32> to vector<2x15x16xf32>
    %35 = arith.minimumf %33, %34 : vector<2x15x16xf32>
    %c0_64 = arith.constant 0 : index
    %c0_65 = arith.constant 0 : index
    %c0_66 = arith.constant 0 : index
    %36 = vector.load %arg5[%c0_64, %c0_65, %c0_66] : memref<2x16x16xf32, #tpu.memory_space<vmem>>, vector<2x15x16xf32>
    tpu.vector_store %arg5[%c0_64, %c0_65, %c0_66], %35 {strides = array<i32>} : memref<2x16x16xf32, #tpu.memory_space<vmem>>, vector<2x15x16xf32>,
    %c0_67 = arith.constant 0 : index
    %c1_68 = arith.constant 1 : index
    %c0_69 = arith.constant 0 : index
    %37 = vector.load %arg5[%c0_67, %c1_68, %c0_69] : memref<2x16x16xf32, #tpu.memory_space<vmem>>, vector<2x15x16xf32>
    %38 = vector.extract_strided_slice %21 {offsets = [0, 0, 0], sizes = [2, 15, 16], strides = [1, 1, 1]} : vector<2x16x16xf32> to vector<2x15x16xf32>
    %39 = arith.minimumf %37, %38 : vector<2x15x16xf32>
    %c0_70 = arith.constant 0 : index
    %c1_71 = arith.constant 1 : index
    %c0_72 = arith.constant 0 : index
    %40 = vector.load %arg5[%c0_70, %c1_71, %c0_72] : memref<2x16x16xf32, #tpu.memory_space<vmem>>, vector<2x15x16xf32>
    tpu.vector_store %arg5[%c0_70, %c1_71, %c0_72], %39 {strides = array<i32>} : memref<2x16x16xf32, #tpu.memory_space<vmem>>, vector<2x15x16xf32>,
    %c0_73 = arith.constant 0 : index
    %c0_74 = arith.constant 0 : index
    %c0_75 = arith.constant 0 : index
    %41 = vector.load %arg5[%c0_73, %c0_74, %c0_75] : memref<2x16x16xf32, #tpu.memory_space<vmem>>, vector<2x16x16xf32>
    %42 = arith.subf %31, %41 : vector<2x16x16xf32>
    %c0_76 = arith.constant 0 : index
    %c0_77 = arith.constant 0 : index
    %c0_78 = arith.constant 0 : index
    %43 = vector.load %arg4[%c0_76, %c0_77, %c0_78] : memref<2x16x16xf32, #tpu.memory_space<vmem>>, vector<2x16x16xf32>
    tpu.vector_store %arg4[%c0_76, %c0_77, %c0_78], %42 {strides = array<i32>} : memref<2x16x16xf32, #tpu.memory_space<vmem>>, vector<2x16x16xf32>,
    %c0_79 = arith.constant 0 : index
    %c0_80 = arith.constant 0 : index
    %c0_81 = arith.constant 0 : index
    %44 = vector.load %arg4[%c0_79, %c0_80, %c0_81] : memref<2x16x16xf32, #tpu.memory_space<vmem>>, vector<2x16x15xf32>
    %45 = vector.extract_strided_slice %42 {offsets = [0, 0, 1], sizes = [2, 16, 15], strides = [1, 1, 1]} : vector<2x16x16xf32> to vector<2x16x15xf32>
    %46 = arith.addf %44, %45 : vector<2x16x15xf32>
    %c0_82 = arith.constant 0 : index
    %c0_83 = arith.constant 0 : index
    %c0_84 = arith.constant 0 : index
    %47 = vector.load %arg4[%c0_82, %c0_83, %c0_84] : memref<2x16x16xf32, #tpu.memory_space<vmem>>, vector<2x16x15xf32>
    tpu.vector_store %arg4[%c0_82, %c0_83, %c0_84], %46 {strides = array<i32>} : memref<2x16x16xf32, #tpu.memory_space<vmem>>, vector<2x16x15xf32>,
    %c0_85 = arith.constant 0 : index
    %c0_86 = arith.constant 0 : index
    %c1_87 = arith.constant 1 : index
    %48 = vector.load %arg4[%c0_85, %c0_86, %c1_87] : memref<2x16x16xf32, #tpu.memory_space<vmem>>, vector<2x16x15xf32>
    %49 = vector.extract_strided_slice %42 {offsets = [0, 0, 0], sizes = [2, 16, 15], strides = [1, 1, 1]} : vector<2x16x16xf32> to vector<2x16x15xf32>
    %50 = arith.addf %48, %49 : vector<2x16x15xf32>
    %c0_88 = arith.constant 0 : index
    %c0_89 = arith.constant 0 : index
    %c1_90 = arith.constant 1 : index
    %51 = vector.load %arg4[%c0_88, %c0_89, %c1_90] : memref<2x16x16xf32, #tpu.memory_space<vmem>>, vector<2x16x15xf32>
    tpu.vector_store %arg4[%c0_88, %c0_89, %c1_90], %50 {strides = array<i32>} : memref<2x16x16xf32, #tpu.memory_space<vmem>>, vector<2x16x15xf32>,
    %c0_91 = arith.constant 0 : index
    %c0_92 = arith.constant 0 : index
    %c0_93 = arith.constant 0 : index
    %52 = vector.load %arg4[%c0_91, %c0_92, %c0_93] : memref<2x16x16xf32, #tpu.memory_space<vmem>>, vector<2x16x14xf32>
    %53 = vector.extract_strided_slice %42 {offsets = [0, 0, 2], sizes = [2, 16, 14], strides = [1, 1, 1]} : vector<2x16x16xf32> to vector<2x16x14xf32>
    %54 = arith.addf %52, %53 : vector<2x16x14xf32>
    %c0_94 = arith.constant 0 : index
    %c0_95 = arith.constant 0 : index
    %c0_96 = arith.constant 0 : index
    %55 = vector.load %arg4[%c0_94, %c0_95, %c0_96] : memref<2x16x16xf32, #tpu.memory_space<vmem>>, vector<2x16x14xf32>
    tpu.vector_store %arg4[%c0_94, %c0_95, %c0_96], %54 {strides = array<i32>} : memref<2x16x16xf32, #tpu.memory_space<vmem>>, vector<2x16x14xf32>,
    %c0_97 = arith.constant 0 : index
    %c0_98 = arith.constant 0 : index
    %c2 = arith.constant 2 : index
    %56 = vector.load %arg4[%c0_97, %c0_98, %c2] : memref<2x16x16xf32, #tpu.memory_space<vmem>>, vector<2x16x14xf32>
    %57 = vector.extract_strided_slice %42 {offsets = [0, 0, 0], sizes = [2, 16, 14], strides = [1, 1, 1]} : vector<2x16x16xf32> to vector<2x16x14xf32>
    %58 = arith.addf %56, %57 : vector<2x16x14xf32>
    %c0_99 = arith.constant 0 : index
    %c0_100 = arith.constant 0 : index
    %c2_101 = arith.constant 2 : index
    %59 = vector.load %arg4[%c0_99, %c0_100, %c2_101] : memref<2x16x16xf32, #tpu.memory_space<vmem>>, vector<2x16x14xf32>
    tpu.vector_store %arg4[%c0_99, %c0_100, %c2_101], %58 {strides = array<i32>} : memref<2x16x16xf32, #tpu.memory_space<vmem>>, vector<2x16x14xf32>,
    %c0_102 = arith.constant 0 : index
    %c0_103 = arith.constant 0 : index
    %c0_104 = arith.constant 0 : index
    %60 = vector.load %arg4[%c0_102, %c0_103, %c0_104] : memref<2x16x16xf32, #tpu.memory_space<vmem>>, vector<2x16x16xf32>
    %c0_105 = arith.constant 0 : index
    %c0_106 = arith.constant 0 : index
    %c0_107 = arith.constant 0 : index
    %61 = vector.load %arg5[%c0_105, %c0_106, %c0_107] : memref<2x16x16xf32, #tpu.memory_space<vmem>>, vector<2x16x16xf32>
    tpu.vector_store %arg5[%c0_105, %c0_106, %c0_107], %60 {strides = array<i32>} : memref<2x16x16xf32, #tpu.memory_space<vmem>>, vector<2x16x16xf32>,
    %c0_108 = arith.constant 0 : index
    %c0_109 = arith.constant 0 : index
    %c0_110 = arith.constant 0 : index
    %62 = vector.load %arg5[%c0_108, %c0_109, %c0_110] : memref<2x16x16xf32, #tpu.memory_space<vmem>>, vector<2x15x16xf32>
    %63 = vector.extract_strided_slice %60 {offsets = [0, 1, 0], sizes = [2, 15, 16], strides = [1, 1, 1]} : vector<2x16x16xf32> to vector<2x15x16xf32>
    %64 = arith.addf %62, %63 : vector<2x15x16xf32>
    %c0_111 = arith.constant 0 : index
    %c0_112 = arith.constant 0 : index
    %c0_113 = arith.constant 0 : index
    %65 = vector.load %arg5[%c0_111, %c0_112, %c0_113] : memref<2x16x16xf32, #tpu.memory_space<vmem>>, vector<2x15x16xf32>
    tpu.vector_store %arg5[%c0_111, %c0_112, %c0_113], %64 {strides = array<i32>} : memref<2x16x16xf32, #tpu.memory_space<vmem>>, vector<2x15x16xf32>,
    %c0_114 = arith.constant 0 : index
    %c1_115 = arith.constant 1 : index
    %c0_116 = arith.constant 0 : index
    %66 = vector.load %arg5[%c0_114, %c1_115, %c0_116] : memref<2x16x16xf32, #tpu.memory_space<vmem>>, vector<2x15x16xf32>
    %67 = vector.extract_strided_slice %60 {offsets = [0, 0, 0], sizes = [2, 15, 16], strides = [1, 1, 1]} : vector<2x16x16xf32> to vector<2x15x16xf32>
    %68 = arith.addf %66, %67 : vector<2x15x16xf32>
    %c0_117 = arith.constant 0 : index
    %c1_118 = arith.constant 1 : index
    %c0_119 = arith.constant 0 : index
    %69 = vector.load %arg5[%c0_117, %c1_118, %c0_119] : memref<2x16x16xf32, #tpu.memory_space<vmem>>, vector<2x15x16xf32>
    tpu.vector_store %arg5[%c0_117, %c1_118, %c0_119], %68 {strides = array<i32>} : memref<2x16x16xf32, #tpu.memory_space<vmem>>, vector<2x15x16xf32>,
    %c0_120 = arith.constant 0 : index
    %c0_121 = arith.constant 0 : index
    %c0_122 = arith.constant 0 : index
    %70 = vector.load %arg5[%c0_120, %c0_121, %c0_122] : memref<2x16x16xf32, #tpu.memory_space<vmem>>, vector<2x14x16xf32>
    %71 = vector.extract_strided_slice %60 {offsets = [0, 2, 0], sizes = [2, 14, 16], strides = [1, 1, 1]} : vector<2x16x16xf32> to vector<2x14x16xf32>
    %72 = arith.addf %70, %71 : vector<2x14x16xf32>
    %c0_123 = arith.constant 0 : index
    %c0_124 = arith.constant 0 : index
    %c0_125 = arith.constant 0 : index
    %73 = vector.load %arg5[%c0_123, %c0_124, %c0_125] : memref<2x16x16xf32, #tpu.memory_space<vmem>>, vector<2x14x16xf32>
    tpu.vector_store %arg5[%c0_123, %c0_124, %c0_125], %72 {strides = array<i32>} : memref<2x16x16xf32, #tpu.memory_space<vmem>>, vector<2x14x16xf32>,
    %c0_126 = arith.constant 0 : index
    %c2_127 = arith.constant 2 : index
    %c0_128 = arith.constant 0 : index
    %74 = vector.load %arg5[%c0_126, %c2_127, %c0_128] : memref<2x16x16xf32, #tpu.memory_space<vmem>>, vector<2x14x16xf32>
    %75 = vector.extract_strided_slice %60 {offsets = [0, 0, 0], sizes = [2, 14, 16], strides = [1, 1, 1]} : vector<2x16x16xf32> to vector<2x14x16xf32>
    %76 = arith.addf %74, %75 : vector<2x14x16xf32>
    %c0_129 = arith.constant 0 : index
    %c2_130 = arith.constant 2 : index
    %c0_131 = arith.constant 0 : index
    %77 = vector.load %arg5[%c0_129, %c2_130, %c0_131] : memref<2x16x16xf32, #tpu.memory_space<vmem>>, vector<2x14x16xf32>
    tpu.vector_store %arg5[%c0_129, %c2_130, %c0_131], %76 {strides = array<i32>} : memref<2x16x16xf32, #tpu.memory_space<vmem>>, vector<2x14x16xf32>,
    %c0_132 = arith.constant 0 : index
    %c0_133 = arith.constant 0 : index
    %c0_134 = arith.constant 0 : index
    %78 = vector.load %arg5[%c0_132, %c0_133, %c0_134] : memref<2x16x16xf32, #tpu.memory_space<vmem>>, vector<2x16x16xf32>
    %cst = arith.constant 4.000000e-01 : f32
    %79 = vector.broadcast %cst : f32 to vector<2x16x16xf32>
    %80 = arith.mulf %79, %78 : vector<2x16x16xf32>
    %cst_135 = arith.constant 1.000000e+00 : f32
    %81 = vector.broadcast %cst_135 : f32 to vector<2x16x16xf32>
    %82 = arith.addf %81, %80 : vector<2x16x16xf32>
    %cst_136 = arith.constant 0.000000e+00 : f32
    %83 = vector.broadcast %cst_136 : f32 to vector<2x16x16xf32>
    %84 = arith.maximumf %0, %83 : vector<2x16x16xf32>
    %85 = arith.mulf %0, %1 : vector<2x16x16xf32>
    %86 = arith.subf %84, %85 : vector<2x16x16xf32>
    %87 = math.absf %0 : vector<2x16x16xf32>
    %cst_137 = arith.constant 0.000000e+00 : f32
    %88 = vector.broadcast %cst_137 : f32 to vector<2x16x16xf32>
    %89 = arith.subf %88, %87 : vector<2x16x16xf32>
    %90 = math.exp %89 : vector<2x16x16xf32>
    %cst_138 = arith.constant 1.000000e+00 : f32
    %91 = vector.broadcast %cst_138 : f32 to vector<2x16x16xf32>
    %92 = arith.addf %91, %90 : vector<2x16x16xf32>
    %93 = math.log %92 : vector<2x16x16xf32>
    %94 = arith.addf %86, %93 : vector<2x16x16xf32>
    %95 = arith.mulf %82, %94 : vector<2x16x16xf32>
    %96 = vector.shape_cast %95 : vector<2x16x16xf32> to vector<1x2x16x16xf32>
    %cst_139 = arith.constant dense<0.000000e+00> : vector<1xf32>
    %97 = vector.multi_reduction <add>, %96, %cst_139 [1, 2, 3] : vector<1x2x16x16xf32> to vector<1xf32>
    %98 = vector.shape_cast %97 : vector<1xf32> to vector<1x1x1x1xf32>
    %99 = vector.extract %98[0, 0, 0, 0] : f32 from vector<1x1x1x1xf32>
    %100 = vector.broadcast %99 : f32 to vector<1x1x128xf32>
    %c0_140 = arith.constant 0 : index
    %c0_141 = arith.constant 0 : index
    %c0_142 = arith.constant 0 : index
    %101 = vector.load %arg3[%c0_140, %c0_141, %c0_142] : memref<1x1x128xf32, #tpu.memory_space<vmem>>, vector<1x1x128xf32>
    tpu.vector_store %arg3[%c0_140, %c0_141, %c0_142], %100 {strides = array<i32>} : memref<1x1x128xf32, #tpu.memory_space<vmem>>, vector<1x1x128xf32>,
    return
  }
  func.func @transform_0(%arg0: i32) -> (i32, i32, i32) {
    %c0_i32 = arith.constant 0 : i32
    %c0_i32_0 = arith.constant 0 : i32
    %c0_i32_1 = arith.constant 0 : i32
    return %arg0, %c0_i32, %c0_i32_0 : i32, i32, i32
  }
  func.func @transform_1(%arg0: i32) -> (i32, i32, i32) {
    %c0_i32 = arith.constant 0 : i32
    %c0_i32_0 = arith.constant 0 : i32
    %c0_i32_1 = arith.constant 0 : i32
    return %arg0, %c0_i32, %c0_i32_0 : i32, i32, i32
  }
  func.func @transform_2(%arg0: i32) -> (i32, i32, i32) {
    %c0_i32 = arith.constant 0 : i32
    %c0_i32_0 = arith.constant 0 : i32
    %c0_i32_1 = arith.constant 0 : i32
    return %arg0, %c0_i32, %c0_i32_0 : i32, i32, i32
  }
}

</mosaic_0001>

<bundles_post_ra>
// kernel: boundary_loss_pallas.1
= control target key start
LH: loop header
LB: loop body
LE: loop exit
PB: predicated region body
PF: predicated region fallthrough
CT: control target
= control target key end

     0   :  { %7 = vsyncpa [#allocation5], 0  ;;  %s1311_s0 = inlined_call_operand.hbm [shape: f32[8,16,16], index: 0, kind: input, shape index: {}]   ;;  %s1312_s1 = inlined_call_operand.hbm [shape: f32[8,16,16], index: 1, kind: input, shape index: {}]   ;;  %s1313_s2 = inlined_call_operand.vmem [shape: f32[4,1,128], index: 2, kind: output, shape index: {}]  }
   0x1   :  { %9 = vsyncpa [#allocation5 + $0x1], 0 }
   0x2   :  { %10 = vsyncpa [#allocation7], 0 }
   0x3   :  { %12 = vsyncpa [#allocation7 + $0x1], 0  ;;  %s966_s9 = smov 0   ;;  %s968_s10 = smov 0  }
   0x4   :  { %s970_s11 = smov 0   ;;  %s972_s12 = smov 0  }
   0x5 LB: > { %s985_s13 = sadd.s32 4294967295, %s943_s12   ;;  %s988_s14 = sadd.s32 1, %s943_s12   ;;  %s943_s12 = sphi %s972_s12, %s1321_s12   ;;  %s939_s11 = sphi %s970_s11, %s1320_s11   ;;  %s935_s10 = sphi %s968_s10, %s1319_s10   ;;  %s931_s9 = sphi %s966_s9, %s1318_s9  }
   0x6   : > { %s22_s15 = ssub.s32 %s943_s12, %s988_s14  ;;  %s25_s16 = sadd.s32 1, %s939_s11 }
   0x7   : > { %p23_p0 = scmp.eq.s32.totalorder %s22_s15, 0  ;;  %p32_p1 = scmp.ne.s32.totalorder %s939_s11, %s935_s10 }
   0x8   : > { %p33_p2 = scmp.eq.s32.totalorder %s943_s12, 0  ;;  %p38_p3 = scmp.ne.s32.totalorder %s935_s10, %s931_s9 }
   0x9   : > { %s998_s17 = scalar_select %p23_p0, %s939_s11, %s25_s16  }
   0xa   : > { %p1000_p4 = por %p33_p2, %p32_p1  ;;  %p39_p5 = scmp.eq.s32.totalorder %s985_s13, 0 }
   0xb   : > { %p790_p6 = scmp.lt.s32.totalorder %s943_s12, 4  ;;  %s1011_s20 = sand.u32 1, %s939_s11  }
   0xc   : > { %p1006_p7 = por %p39_p5, %p38_p3  ;;  %s760_s21 = sshll.u32 %s1011_s20, 5 }
   0xd   : > { %s774_s22 = sshll.u32 %s943_s12, 5  ;;  %s118_s26 = scalar_lea.vmem [#allocation4], %s760_s21 }
   0xe   : > { %s124_s25 = scalar_lea.hbm %s1311_s0, %s774_s22  ;;  %s127_s27 = sshll.u32 %s118_s26, 4  ;;  %s128_s27 = int_to_ptr.vmem [resolvable:$true] %s127_s27 }
   0xf   : > { %s125_s28 = sshll.u32 %s124_s25, 4  ;;  %p1024_p8 = pnand %p790_p6, %p1000_p4  ;;  %s126_s28 = int_to_ptr.hbm [resolvable:$true] %s125_s28 }
  0x10   : > { %p768_p9 = scmp.ge.s32.totalorder %s943_s12, 1  ;;  %s115_s30 = scalar_lea.sflag [#allocation5], %s1011_s20 }
  0x11   : > { %s845_s3 = sshra.s32 %s126_s28, 4  ;;  %p849_p11 = pneg %p1024_p8  ;;  %s846_s3 = int_to_ptr.hbm [resolvable:$true] %s845_s3 }
  0x12   : > { %s847_s4 = scalar_lea.hbm %s846_s3, 32  ;;  %s852_s7 = scalar_lea.hbm %s1311_s0, 128 }
  0x13   : > { %p848_p10 = scmp.ne.s32.totalorder %s846_s3, %s847_s4  ;;  %p853_p0 = scmp.lt.s32.totalorder %s846_s3, %s1311_s0 }
  0x14   : > { %p854_p1 = scmp.lt.s32.totalorder %s852_s7, %s847_s4 }
  0x15   : > { %p850_p12 = pnand %p849_p11, %p848_p10 }
  0x16   : > { %p855_p2 = por %p854_p1, %p853_p0 }
  0x17   : > { %p851_p13 = pneg %p850_p12 }
  0x19   : > { %p856_p3 = pnand %p855_p2, %p851_p13 }
  0x1b   : > { %859 = shalt.err (!%p856_p3)
}
  0x1c   : > { %s945_s15 = smov 128   ;;  %s946_s16 = smov 8  }
  0x1d   : > { %786 = dma.hbm_to_vmem [thread:$0]  (!%p1024_p8), %s126_s28, 512, %s128_s27, %s115_s30, %s945_s15, %s945_s15, %s946_s16  }
  0x1e   : > { %p158_p4 = scmp.lt.s32.totalorder %s943_s12, 5  ;;  %s147_s24 = scalar_lea.hbm %s1312_s1, %s774_s22 }
  0x1f   : > { %s148_s26 = sshll.u32 %s147_s24, 4  ;;  %s141_s3 = scalar_lea.vmem [#allocation6], %s760_s21  ;;  %s149_s26 = int_to_ptr.hbm [resolvable:$true] %s148_s26 }
  0x20   : > { %p1051_p5 = pnand %p768_p9, %p158_p4  ;;  %s150_s4 = sshll.u32 %s141_s3, 4  ;;  %s151_s4 = int_to_ptr.vmem [resolvable:$true] %s150_s4 }
  0x21   : > { %s138_s5 = scalar_lea.sflag [#allocation7], %s1011_s20  ;;  %s875_s6 = sshra.s32 %s149_s26, 4  ;;  %s876_s6 = int_to_ptr.hbm [resolvable:$true] %s875_s6 }
  0x22   : > { %s877_s27 = scalar_lea.hbm %s876_s6, 32  ;;  %s882_s28 = scalar_lea.hbm %s1312_s1, 128 }
  0x23   : > { %p878_p6 = scmp.ne.s32.totalorder %s876_s6, %s877_s27  ;;  %p883_p9 = scmp.lt.s32.totalorder %s876_s6, %s1312_s1 }
  0x24   : > { %p884_p13 = scmp.lt.s32.totalorder %s882_s28, %s877_s27 }
  0x25   : > { %p880_p10 = pnand %p878_p6, %p849_p11 }
  0x26   : > { %p885_p0 = por %p884_p13, %p883_p9 }
  0x27   : > { %p881_p12 = pneg %p880_p10 }
  0x29   : > { %p886_p1 = pnand %p885_p0, %p881_p12 }
  0x2b   : > { %889 = shalt.err (!%p886_p1)
}
  0x2c   : > { %789 = dma.hbm_to_vmem [thread:$0]  (!%p1024_p8), %s149_s26, 512, %s151_s4, %s138_s5, %s945_s15, %s945_s15, %s946_s16  }
  0x2d   : > { %162 = sbr.rel (%p1051_p5) target bundleno = 636 (0x27c), region = 28  ;;  %s164_s20 = sand.u32 (!%p1051_p5), 1, %s935_s10  }
  0x2e   : > { %s769_s21 = sshll.u32 (!%p1051_p5), %s164_s20, 5  ;;  %s165_s8 = scalar_lea.sflag (!%p1051_p5), [#allocation5], %s164_s20 }
  0x2f   : > { %s1072_s9 = scalar_lea.vmem (!%p1051_p5), [#allocation4], %s769_s21 }
  0x32   : > { %922 = dma.done.wait (%p1006_p7), %s165_s8, 512  }
  0x33   : > { %924 = vsyncadd (%p1006_p7), %s165_s8, 4294966784  ;;  %s175_s18 = scalar_lea.sflag [#allocation7], %s164_s20  ;;  %s178_s23 = scalar_lea.vmem [#allocation6], %s769_s21 }
  0x34   : > { %926 = dma.done.wait (%p1006_p7), %s175_s18, 512  }
  0x35   : > { %928 = vsyncadd (%p1006_p7), %s175_s18, 4294966784  ;;  %v1082_v0 = vld [vmem:[%s178_s23 + $0x10] sm:$0xff]  ;;  %vm216_vm0 = vcmask 130048   ;;  %v1084_v1 = vld [vmem:[%s178_s23] sm:$0xff]  ;;  %s947_s29 = smov 127   ;;  %s948_s19 = smov 1  }
  0x36   : > { %233 = vrot.lane.b32.xlu1 %v1082_v0, %s947_s29  ;;  %219 = vst.msk [vmem:[#allocation2 + $0x10] sm:$0xff] %vm216_vm0, %v1082_v0  ;;  %229 = vrot.lane.b32.xlu0 %v1084_v1, %s947_s29  ;;  %v1100_v2 = vld [vmem:[%s178_s23 + $0x18] sm:$0xff]  ;;  %v1106_v3 = vld [vmem:[%s178_s23 + $0x8] sm:$0xff]  ;;  %vm245_vm1 = vcmask 121856   ;;  %vm270_vm2 = vcmask 130056   ;;  %vm323_vm3 = vcmask 1046528  }
  0x37   : > { %281 = vst.msk [vmem:[#allocation3 + $0x10] sm:$0xff] %vm216_vm0, %v1082_v0  ;;  %254 = vrot.lane.b32.xlu2 %v1084_v1, %s948_s19  ;;  %vm339_vm4 = vcmask 129024   ;;  %s949_s15 = smov 126   ;;  %s950_s16 = smov 2   ;;  %vm485_vm5 = vcmask 113664   ;;  %vm510_vm6 = vcmask 130064  }
  0x38   : > { %217 = vst.msk [vmem:[#allocation2] sm:$0xff] %vm216_vm0, %v1084_v1  ;;  %vm565_vm7 = vcmask 1045504   ;;  %vm581_vm8 = vcmask 128000   ;;  %p205_p7 = scmp.lt.s32.totalorder %s985_s13, 3 }
  0x39   : > { %279 = vst.msk [vmem:[#allocation3] sm:$0xff] %vm216_vm0, %v1084_v1 }
  0x3a   : > { %220 = vst.msk [vmem:[#allocation2 + $0x18] sm:$0xff] %vm216_vm0, %v1100_v2  ;;  %s1323_s13 = smov (!%p205_p7, %s985_s13), 3 }
  0x3b   : > { %282 = vst.msk [vmem:[#allocation3 + $0x18] sm:$0xff] %vm216_vm0, %v1100_v2  ;;  %s207_s26 = scalar_lea.vmem %s1313_s2, %s1323_s13 }
  0x3c   : > { %218 = vst.msk [vmem:[#allocation2 + $0x8] sm:$0xff] %vm216_vm0, %v1106_v3 }
  0x3d   : > { %280 = vst.msk [vmem:[#allocation3 + $0x8] sm:$0xff] %vm216_vm0, %v1106_v3  ;;  %v223_v4 = vld [vmem:[#allocation2 + $0x10] sm:$0xff] }
  0x3e   : > { %235 = vrot.lane.b32.xlu1 %v1100_v2, %s947_s29  ;;  %231 = vrot.lane.b32.xlu0 %v1106_v3, %s947_s29  ;;  %v285_v5 = vld [vmem:[#allocation3 + $0x10] sm:$0xff] }
  0x3f   : > { %256 = vrot.lane.b32.xlu2 %v1106_v3, %s948_s19  ;;  %v221_v6 = vld [vmem:[#allocation2] sm:$0xff] }
  0x40   : > { %v283_v7 = vld [vmem:[#allocation3] sm:$0xff] }
  0x41   : > { %v224_v14 = vld [vmem:[#allocation2 + $0x18] sm:$0xff] }
  0x42   : > { %v286_v15 = vld [vmem:[#allocation3 + $0x18] sm:$0xff] }
  0x43   : > { %v222_v16 = vld [vmem:[#allocation2 + $0x8] sm:$0xff] }
  0x44   : > { %v284_v17 = vld [vmem:[#allocation3 + $0x8] sm:$0xff] }
  0x46   : > { %258 = vrot.lane.b32.xlu0 %v1082_v0, %s948_s19  ;;  %260 = vrot.lane.b32.xlu1 %v1100_v2, %s948_s19 }
  0x91   : > { %v255_v18 = vpop.permute.xlu2 %254 }
  0x99   : > { %v257_v36 = vpop.permute.xlu2 %256 }
  0xa8   : > { %v234_v8 = vpop.permute.xlu1 %233  ;;  %v230_v9 = vpop.permute.xlu0 %229 }
  0xa9   : > { %v243_v10 = vmax.f32 %v223_v4, %v234_v8  ;;  %v289_v11 = vmin.f32 %v285_v5, %v234_v8  ;;  %v241_v12 = vmax.f32 %v221_v6, %v230_v9  ;;  %v287_v13 = vmin.f32 %v283_v7, %v230_v9 }
  0xab   : > { %248 = vst.msk [vmem:[#allocation2 + $0x10] sm:$0xff] %vm245_vm1, %v243_v10 }
  0xac   : > { %293 = vst.msk [vmem:[#allocation3 + $0x10] sm:$0xff] %vm245_vm1, %v289_v11 }
  0xad   : > { %246 = vst.msk [vmem:[#allocation2] sm:$0xff] %vm245_vm1, %v241_v12 }
  0xae   : > { %291 = vst.msk [vmem:[#allocation3] sm:$0xff] %vm245_vm1, %v287_v13 }
  0xb0   : > { %v236_v19 = vpop.permute.xlu1 %235  ;;  %v232_v20 = vpop.permute.xlu0 %231 }
  0xb1   : > { %v244_v21 = vmax.f32 %v224_v14, %v236_v19  ;;  %v290_v22 = vmin.f32 %v286_v15, %v236_v19  ;;  %v242_v23 = vmax.f32 %v222_v16, %v232_v20  ;;  %v288_v24 = vmin.f32 %v284_v17, %v232_v20 }
  0xb2   : > { %v252_v29 = vld [vmem:[#allocation2 + $0x10] sm:$0xff] }
  0xb3   : > { %249 = vst.msk [vmem:[#allocation2 + $0x18] sm:$0xff] %vm245_vm1, %v244_v21  ;;  %v297_v30 = vld [vmem:[#allocation3 + $0x10] sm:$0xff] }
  0xb4   : > { %294 = vst.msk [vmem:[#allocation3 + $0x18] sm:$0xff] %vm245_vm1, %v290_v22  ;;  %v250_v25 = vld [vmem:[#allocation2] sm:$0xff] }
  0xb5   : > { %247 = vst.msk [vmem:[#allocation2 + $0x8] sm:$0xff] %vm245_vm1, %v242_v23  ;;  %v266_v26 = vmax.f32 %v250_v25, %v255_v18  ;;  %v295_v27 = vld [vmem:[#allocation3] sm:$0xff] }
  0xb6   : > { %292 = vst.msk [vmem:[#allocation3 + $0x8] sm:$0xff] %vm245_vm1, %v288_v24  ;;  %v299_v28 = vmin.f32 %v295_v27, %v255_v18 }
  0xb7   : > { %271 = vst.msk [vmem:[#allocation2] sm:$0xff] %vm270_vm2, %v266_v26 }
  0xb8   : > { %303 = vst.msk [vmem:[#allocation3] sm:$0xff] %vm270_vm2, %v299_v28  ;;  %v259_v31 = vpop.permute.xlu0 %258  ;;  %v261_v32 = vpop.permute.xlu1 %260 }
  0xb9   : > { %v268_v33 = vmax.f32 %v252_v29, %v259_v31  ;;  %v301_v34 = vmin.f32 %v297_v30, %v259_v31 }
  0xba   : > { %v253_v35 = vld [vmem:[#allocation2 + $0x18] sm:$0xff] }
  0xbb   : > { %273 = vst.msk [vmem:[#allocation2 + $0x10] sm:$0xff] %vm270_vm2, %v268_v33  ;;  %v298_v37 = vld [vmem:[#allocation3 + $0x18] sm:$0xff]  ;;  %v269_v38 = vmax.f32 %v253_v35, %v261_v32 }
  0xbc   : > { %305 = vst.msk [vmem:[#allocation3 + $0x10] sm:$0xff] %vm270_vm2, %v301_v34  ;;  %v302_v39 = vmin.f32 %v298_v37, %v261_v32  ;;  %v251_v40 = vld [vmem:[#allocation2 + $0x8] sm:$0xff] }
  0xbd   : > { %274 = vst.msk [vmem:[#allocation2 + $0x18] sm:$0xff] %vm270_vm2, %v269_v38  ;;  %v267_v41 = vmax.f32 %v251_v40, %v257_v36  ;;  %v296_v42 = vld [vmem:[#allocation3 + $0x8] sm:$0xff] }
  0xbe   : > { %v1135_v43 = vld [vmem:[#allocation2] sm:$0xff]  ;;  %306 = vst.msk [vmem:[#allocation3 + $0x18] sm:$0xff] %vm270_vm2, %v302_v39  ;;  %v300_v44 = vmin.f32 %v296_v42, %v257_v36 }
  0xbf   : > { %v1138_v45 = vld [vmem:[#allocation3] sm:$0xff]  ;;  %311 = vst.msk [vmem:[#allocation2] sm:$0xff] %vm216_vm0, %v1135_v43  ;;  %v324_v54 = vrot.slane %v1135_v43, 1 }
  0xc0   : > { %359 = vst.msk [vmem:[#allocation3] sm:$0xff] %vm216_vm0, %v1138_v45  ;;  %v371_v58 = vrot.slane %v1138_v45, 1 }
  0xc1   : > { %272 = vst.msk [vmem:[#allocation2 + $0x8] sm:$0xff] %vm270_vm2, %v267_v41 }
  0xc2   : > { %v277_v46 = vld [vmem:[#allocation2 + $0x10] sm:$0xff]  ;;  %304 = vst.msk [vmem:[#allocation3 + $0x8] sm:$0xff] %vm270_vm2, %v300_v44 }
  0xc3   : > { %v309_v47 = vld [vmem:[#allocation3 + $0x10] sm:$0xff]  ;;  %313 = vst.msk [vmem:[#allocation2 + $0x10] sm:$0xff] %vm216_vm0, %v277_v46  ;;  %v327_v52 = vrot.slane %v277_v46, 1 }
  0xc4   : > { %361 = vst.msk [vmem:[#allocation3 + $0x10] sm:$0xff] %vm216_vm0, %v309_v47  ;;  %v278_v48 = vld [vmem:[#allocation2 + $0x18] sm:$0xff]  ;;  %v374_v55 = vrot.slane %v309_v47, 1 }
  0xc5   : > { %v1148_v49 = vld [vmem:[#allocation3 + $0x18] sm:$0xff]  ;;  %314 = vst.msk [vmem:[#allocation2 + $0x18] sm:$0xff] %vm216_vm0, %v278_v48  ;;  %v328_v50 = vrot.slane %v278_v48, 1 }
  0xc6   : > { %362 = vst.msk [vmem:[#allocation3 + $0x18] sm:$0xff] %vm216_vm0, %v1148_v49  ;;  %v375_v51 = vrot.slane %v1148_v49, 1  ;;  %v315_v8 = vld [vmem:[#allocation2] sm:$0xff] }
  0xc7   : > { %v329_v60 = vsel %vm323_vm3, %v327_v52, %v328_v50  ;;  %v363_v13 = vld [vmem:[#allocation3] sm:$0xff] }
  0xc8   : > { %v276_v53 = vld [vmem:[#allocation2 + $0x8] sm:$0xff]  ;;  %v376_v4 = vsel %vm323_vm3, %v374_v55, %v375_v51 }
  0xc9   : > { %v308_v56 = vld [vmem:[#allocation3 + $0x8] sm:$0xff]  ;;  %312 = vst.msk [vmem:[#allocation2 + $0x8] sm:$0xff] %vm216_vm0, %v276_v53  ;;  %v325_v57 = vrot.slane %v276_v53, 1 }
  0xca   : > { %v317_v59 = vld [vmem:[#allocation2 + $0x10] sm:$0xff]  ;;  %360 = vst.msk [vmem:[#allocation3 + $0x8] sm:$0xff] %vm216_vm0, %v308_v56  ;;  %v372_v61 = vrot.slane %v308_v56, 1 }
  0xcb   : > { %v336_v62 = vmax.f32 %v317_v59, %v329_v60  ;;  %v365_v63 = vld [vmem:[#allocation3 + $0x10] sm:$0xff]  ;;  %v326_v5 = vsel %vm323_vm3, %v324_v54, %v325_v57 }
  0xcc   : > { %v318_v6 = vld [vmem:[#allocation2 + $0x18] sm:$0x7f]  ;;  %v383_v7 = vmin.f32 %v365_v63, %v376_v4  ;;  %v373_v9 = vsel %vm323_vm3, %v371_v58, %v372_v61  ;;  %v334_v12 = vmax.f32 %v315_v8, %v326_v5 }
  0xcd   : > { %v337_v10 = vmax.f32 %v318_v6, %v328_v50  ;;  %341 = vst.msk [vmem:[#allocation2 + $0x10] sm:$0xff] %vm216_vm0, %v336_v62  ;;  %v366_v11 = vld [vmem:[#allocation3 + $0x18] sm:$0x7f]  ;;  %v381_v15 = vmin.f32 %v363_v13, %v373_v9 }
  0xce   : > { %v384_v14 = vmin.f32 %v366_v11, %v375_v51  ;;  %387 = vst.msk [vmem:[#allocation3 + $0x10] sm:$0xff] %vm216_vm0, %v383_v7 }
  0xcf   : > { %342 = vst.msk [vmem:[#allocation2 + $0x18] sm:$0x7f] %vm339_vm4, %v337_v10 }
  0xd0   : > { %388 = vst.msk [vmem:[#allocation3 + $0x18] sm:$0x7f] %vm339_vm4, %v384_v14  ;;  %v316_v16 = vld [vmem:[#allocation2 + $0x8] sm:$0x7f] }
  0xd1   : > { %v335_v17 = vmax.f32 %v316_v16, %v325_v57  ;;  %338 = vst.msk [vmem:[#allocation2] sm:$0xff] %vm216_vm0, %v334_v12  ;;  %v364_v18 = vld [vmem:[#allocation3 + $0x8] sm:$0x7f] }
  0xd2   : > { %v382_v19 = vmin.f32 %v364_v18, %v372_v61  ;;  %385 = vst.msk [vmem:[#allocation3] sm:$0xff] %vm216_vm0, %v381_v15 }
  0xd3   : > { %340 = vst.msk [vmem:[#allocation2 + $0x8] sm:$0x7f] %vm339_vm4, %v335_v17 }
  0xd4   : > { %386 = vst.msk [vmem:[#allocation3 + $0x8] sm:$0x7f] %vm339_vm4, %v382_v19 }
  0xd6   : > { %v345_v20 = vld [vmem:[#allocation2 + $0x11] sm:$0xff]  ;;  %v346_v21 = vld [vmem:[#allocation2 + $0x19] sm:$0x7f] }
  0xd7   : > { %v349_v22 = vmax.f32 %v345_v20, %v277_v46  ;;  %v350_v23 = vmax.f32 %v346_v21, %v278_v48  ;;  %v391_v24 = vld [vmem:[#allocation3 + $0x11] sm:$0xff]  ;;  %v392_v25 = vld [vmem:[#allocation3 + $0x19] sm:$0x7f] }
  0xd8   : > { %v395_v26 = vmin.f32 %v391_v24, %v309_v47  ;;  %v396_v27 = vmin.f32 %v392_v25, %v1148_v49 }
  0xd9   : > { %353 = vst.msk [vmem:[#allocation2 + $0x11] sm:$0xff] %vm216_vm0, %v349_v22 }
  0xda   : > { %354 = vst.msk [vmem:[#allocation2 + $0x19] sm:$0x7f] %vm339_vm4, %v350_v23  ;;  %v343_v28 = vld [vmem:[#allocation2 + $0x1] sm:$0xff]  ;;  %v344_v29 = vld [vmem:[#allocation2 + $0x9] sm:$0x7f] }
  0xdb   : > { %399 = vst.msk [vmem:[#allocation3 + $0x11] sm:$0xff] %vm216_vm0, %v395_v26  ;;  %v347_v30 = vmax.f32 %v343_v28, %v1135_v43  ;;  %v348_v31 = vmax.f32 %v344_v29, %v276_v53  ;;  %v389_v32 = vld [vmem:[#allocation3 + $0x1] sm:$0xff]  ;;  %v390_v33 = vld [vmem:[#allocation3 + $0x9] sm:$0x7f] }
  0xdc   : > { %400 = vst.msk [vmem:[#allocation3 + $0x19] sm:$0x7f] %vm339_vm4, %v396_v27  ;;  %v393_v34 = vmin.f32 %v389_v32, %v1138_v45  ;;  %v394_v35 = vmin.f32 %v390_v33, %v308_v56 }
  0xdd   : > { %351 = vst.msk [vmem:[#allocation2 + $0x1] sm:$0xff] %vm216_vm0, %v347_v30 }
  0xde   : > { %352 = vst.msk [vmem:[#allocation2 + $0x9] sm:$0x7f] %vm339_vm4, %v348_v31 }
  0xdf   : > { %397 = vst.msk [vmem:[#allocation3 + $0x1] sm:$0xff] %vm216_vm0, %v393_v34 }
  0xe0   : > { %398 = vst.msk [vmem:[#allocation3 + $0x9] sm:$0x7f] %vm339_vm4, %v394_v35  ;;  %v357_v36 = vld [vmem:[#allocation2 + $0x10] sm:$0xff] }
  0xe1   : > { %v358_v37 = vld [vmem:[#allocation2 + $0x18] sm:$0xff] }
  0xe2   : > { %v403_v38 = vld [vmem:[#allocation3 + $0x10] sm:$0xff] }
  0xe3   : > { %v407_v39 = vsub.f32 %v357_v36, %v403_v38  ;;  %v404_v40 = vld [vmem:[#allocation3 + $0x18] sm:$0xff] }
  0xe4   : > { %v355_v41 = vld [vmem:[#allocation2] sm:$0xff]  ;;  %v408_v42 = vsub.f32 %v358_v37, %v404_v40 }
  0xe5   : > { %425 = vrot.lane.b32.xlu1 %v407_v39, %s947_s29  ;;  %411 = vst.msk [vmem:[#allocation2 + $0x10] sm:$0xff] %vm216_vm0, %v407_v39  ;;  %v356_v43 = vld [vmem:[#allocation2 + $0x8] sm:$0xff] }
  0xe6   : > { %v401_v44 = vld [vmem:[#allocation3] sm:$0xff]  ;;  %412 = vst.msk [vmem:[#allocation2 + $0x18] sm:$0xff] %vm216_vm0, %v408_v42 }
  0xe7   : > { %v402_v45 = vld [vmem:[#allocation3 + $0x8] sm:$0xff]  ;;  %v405_v46 = vsub.f32 %v355_v41, %v401_v44 }
  0xe8   : > { %v406_v47 = vsub.f32 %v356_v43, %v402_v45 }
  0xe9   : > { %421 = vrot.lane.b32.xlu2 %v405_v46, %s947_s29  ;;  %409 = vst.msk [vmem:[#allocation2] sm:$0xff] %vm216_vm0, %v405_v46 }
  0xea   : > { %423 = vrot.lane.b32.xlu0 %v406_v47, %s947_s29  ;;  %410 = vst.msk [vmem:[#allocation2 + $0x8] sm:$0xff] %vm216_vm0, %v406_v47 }
  0xec   : > { %v415_v55 = vld [vmem:[#allocation2 + $0x10] sm:$0xff] }
  0xed   : > { %447 = vrot.lane.b32.xlu1 %v406_v47, %s948_s19  ;;  %v416_v51 = vld [vmem:[#allocation2 + $0x18] sm:$0xff] }
  0xf0   : > { %v413_v49 = vld [vmem:[#allocation2] sm:$0xff] }
  0xf1   : > { %427 = vrot.lane.b32.xlu2 %v408_v42, %s947_s29  ;;  %v414_v58 = vld [vmem:[#allocation2 + $0x8] sm:$0xff] }
  0xf2   : > { %445 = vrot.lane.b32.xlu0 %v405_v46, %s948_s19 }
  0xf5   : > { %469 = vrot.lane.b32.xlu1 %v405_v46, %s949_s15 }
  0xf9   : > { %449 = vrot.lane.b32.xlu2 %v407_v39, %s948_s19 }
  0xfa   : > { %451 = vrot.lane.b32.xlu0 %v408_v42, %s948_s19 }
  0xfd   : > { %475 = vrot.lane.b32.xlu1 %v408_v42, %s949_s15 }
 0x101   : > { %471 = vrot.lane.b32.xlu2 %v406_v47, %s949_s15 }
 0x102   : > { %473 = vrot.lane.b32.xlu0 %v407_v39, %s949_s15 }
 0x105   : > { %498 = vrot.lane.b32.xlu1 %v407_v39, %s950_s16 }
 0x109   : > { %494 = vrot.lane.b32.xlu2 %v405_v46, %s950_s16 }
 0x10a   : > { %496 = vrot.lane.b32.xlu0 %v406_v47, %s950_s16 }
 0x111   : > { %500 = vrot.lane.b32.xlu2 %v408_v42, %s950_s16 }
 0x143   : > { %v422_v48 = vpop.permute.xlu2 %421 }
 0x144   : > { %v433_v50 = vadd.f32 %v422_v48, %v413_v49  ;;  %v1232_v48 = vld [vmem:[%s1072_s9] sm:$0xff] }
 0x146   : > { %437 = vst.msk [vmem:[#allocation2] sm:$0xff] %vm245_vm1, %v433_v50  ;;  %v1235_v50 = vld [vmem:[%s1072_s9 + $0x8] sm:$0xff] }
 0x14b   : > { %v428_v52 = vpop.permute.xlu2 %427 }
 0x14c   : > { %v436_v53 = vadd.f32 %v428_v52, %v416_v51 }
 0x14d   : > { %v441_v5 = vld [vmem:[#allocation2] sm:$0xff] }
 0x14e   : > { %440 = vst.msk [vmem:[#allocation2 + $0x18] sm:$0xff] %vm245_vm1, %v436_v53 }
 0x153   : > { %v450_v61 = vpop.permute.xlu2 %449 }
 0x155   : > { %v444_v12 = vld [vmem:[#allocation2 + $0x18] sm:$0xff] }
 0x157   : > { %v426_v54 = vpop.permute.xlu1 %425 }
 0x158   : > { %v435_v56 = vadd.f32 %v426_v54, %v415_v55  ;;  %v621_v54 = vand.u32 2147483647, %v1232_v48  ;;  %v1241_v55 = vld [vmem:[%s1072_s9 + $0x10] sm:$0xff] }
 0x15a   : > { %439 = vst.msk [vmem:[#allocation2 + $0x10] sm:$0xff] %vm245_vm1, %v435_v56  ;;  %v622_v56 = vand.u32 2147483647, %v1235_v50 }
 0x15b   : > { %v472_v10 = vpop.permute.xlu2 %471 }
 0x15c   : > { %v424_v57 = vpop.permute.xlu0 %423 }
 0x15d   : > { %v434_v59 = vadd.f32 %v424_v57, %v414_v58 }
 0x15f   : > { %438 = vst.msk [vmem:[#allocation2 + $0x8] sm:$0xff] %vm245_vm1, %v434_v59  ;;  %v448_v60 = vpop.permute.xlu1 %447  ;;  %v1246_v59 = vld [vmem:[%s1072_s9 + $0x18] sm:$0xff] }
 0x161   : > { %v443_v62 = vld [vmem:[#allocation2 + $0x10] sm:$0xff] }
 0x162   : > { %v459_v63 = vadd.f32 %v450_v61, %v443_v62  ;;  %v623_v61 = vand.u32 2147483647, %v1241_v55  ;;  %v626_v62 = vsub.f32 0.0, %v622_v56 }
 0x163   : > { %v495_v22 = vpop.permute.xlu2 %494 }
 0x164   : > { %v446_v4 = vpop.permute.xlu0 %445  ;;  %463 = vst.msk [vmem:[#allocation2 + $0x10] sm:$0xff] %vm270_vm2, %v459_v63 }
 0x165   : > { %v457_v6 = vadd.f32 %v446_v4, %v441_v5  ;;  %v624_v5 = vand.u32 2147483647, %v1246_v59 }
 0x166   : > { %v442_v7 = vld [vmem:[#allocation2 + $0x8] sm:$0xff] }
 0x167   : > { %v458_v8 = vadd.f32 %v448_v60, %v442_v7  ;;  %461 = vst.msk [vmem:[#allocation2] sm:$0xff] %vm270_vm2, %v457_v6  ;;  %v470_v9 = vpop.permute.xlu1 %469  ;;  %v625_v60 = vsub.f32 0.0, %v621_v54  ;;  %v610_v54 = vmax.f32 %v1235_v50, 0.0 }
 0x169   : > { %462 = vst.msk [vmem:[#allocation2 + $0x8] sm:$0xff] %vm270_vm2, %v458_v8  ;;  %v627_v8 = vsub.f32 0.0, %v623_v61 }
 0x16b   : > { %v467_v20 = vld [vmem:[#allocation2 + $0x10] sm:$0xff]  ;;  %v501_v33 = vpop.permute.xlu2 %500 }
 0x16c   : > { %v452_v11 = vpop.permute.xlu0 %451 }
 0x16d   : > { %v460_v13 = vadd.f32 %v452_v11, %v444_v12  ;;  %v628_v11 = vsub.f32 0.0, %v624_v5 }
 0x16e   : > { %v465_v14 = vld [vmem:[#allocation2] sm:$0xff] }
 0x16f   : > { %v481_v15 = vadd.f32 %v470_v9, %v465_v14  ;;  %464 = vst.msk [vmem:[#allocation2 + $0x18] sm:$0xff] %vm270_vm2, %v460_v13  ;;  %v476_v18 = vpop.permute.xlu1 %475  ;;  %v629_v9 = vmul.f32 1.442695, %v625_v60  ;;  %v611_v60 = vmax.f32 %v1241_v55, 0.0 }
 0x170   : > { %v466_v16 = vld [vmem:[#allocation2 + $0x8] sm:$0xff] }
 0x171   : > { %486 = vst.msk [vmem:[#allocation2] sm:$0xff] %vm485_vm5, %v481_v15  ;;  %v482_v17 = vadd.f32 %v472_v10, %v466_v16  ;;  %v631_v10 = vmul.f32 1.442695, %v626_v62  ;;  %829 = vpow2.f32 %v629_v9 }
 0x173   : > { %487 = vst.msk [vmem:[#allocation2 + $0x8] sm:$0xff] %vm485_vm5, %v482_v17  ;;  %v633_v17 = vmul.f32 1.442695, %v627_v8  ;;  %831 = vpow2.f32 %v631_v10 }
 0x174   : > { %v474_v19 = vpop.permute.xlu0 %473 }
 0x175   : > { %v483_v21 = vadd.f32 %v474_v19, %v467_v20  ;;  %v635_v19 = vmul.f32 1.442695, %v628_v11  ;;  %833 = vpow2.f32 %v633_v17 }
 0x176   : > { %v468_v23 = vld [vmem:[#allocation2 + $0x18] sm:$0xff] }
 0x177   : > { %v484_v24 = vadd.f32 %v476_v18, %v468_v23  ;;  %488 = vst.msk [vmem:[#allocation2 + $0x10] sm:$0xff] %vm485_vm5, %v483_v21  ;;  %v499_v30 = vpop.permute.xlu1 %498  ;;  %835 = vpow2.f32 %v635_v19 }
 0x178   : > { %v490_v25 = vld [vmem:[#allocation2] sm:$0xff] }
 0x179   : > { %v506_v26 = vadd.f32 %v495_v22, %v490_v25  ;;  %489 = vst.msk [vmem:[#allocation2 + $0x18] sm:$0xff] %vm485_vm5, %v484_v24  ;;  %v830_v25 = vpop.eup %829 }
 0x17a   : > { %v491_v28 = vld [vmem:[#allocation2 + $0x8] sm:$0xff] }
 0x17b   : > { %511 = vst.msk [vmem:[#allocation2] sm:$0xff] %vm510_vm6, %v506_v26 }
 0x17c   : > { %v497_v27 = vpop.permute.xlu0 %496 }
 0x17d   : > { %v507_v29 = vadd.f32 %v497_v27, %v491_v28  ;;  %v832_v27 = vpop.eup %831 }
 0x17e   : > { %v492_v31 = vld [vmem:[#allocation2 + $0x10] sm:$0xff] }
 0x17f   : > { %v508_v32 = vadd.f32 %v499_v30, %v492_v31  ;;  %512 = vst.msk [vmem:[#allocation2 + $0x8] sm:$0xff] %vm510_vm6, %v507_v29  ;;  %v637_v31 = vadd.f32 1.0, %v830_v25 }
 0x180   : > { %v493_v34 = vld [vmem:[#allocation2 + $0x18] sm:$0xff] }
 0x181   : > { %v509_v35 = vadd.f32 %v501_v33, %v493_v34  ;;  %513 = vst.msk [vmem:[#allocation2 + $0x10] sm:$0xff] %vm510_vm6, %v508_v32  ;;  %v834_v32 = vpop.eup %833  ;;  %837 = vlog2.f32 %v637_v31 }
 0x182   : > { %v1208_v36 = vld [vmem:[#allocation2] sm:$0xff] }
 0x183   : > { %519 = vst.msk [vmem:[#allocation3] sm:$0xff] %vm216_vm0, %v1208_v36  ;;  %v531_v38 = vrot.slane %v1208_v36, 1  ;;  %v566_v18 = vrot.slane %v1208_v36, 2 }
 0x184   : > { %514 = vst.msk [vmem:[#allocation2 + $0x18] sm:$0xff] %vm510_vm6, %v509_v35  ;;  %v638_v35 = vadd.f32 1.0, %v832_v27 }
 0x186   : > { %v1213_v37 = vld [vmem:[#allocation2 + $0x8] sm:$0xff]  ;;  %839 = vlog2.f32 %v638_v35 }
 0x187   : > { %520 = vst.msk [vmem:[#allocation3 + $0x8] sm:$0xff] %vm216_vm0, %v1213_v37  ;;  %v532_v39 = vrot.slane %v1213_v37, 1  ;;  %v567_v13 = vrot.slane %v1213_v37, 2 }
 0x188   : > { %v1219_v40 = vld [vmem:[#allocation2 + $0x10] sm:$0xff] }
 0x189   : > { %521 = vst.msk [vmem:[#allocation3 + $0x10] sm:$0xff] %vm216_vm0, %v1219_v40  ;;  %v533_v41 = vsel %vm323_vm3, %v531_v38, %v532_v39  ;;  %v534_v46 = vrot.slane %v1219_v40, 1  ;;  %v568_v20 = vsel %vm565_vm7, %v566_v18, %v567_v13  ;;  %v569_v28 = vrot.slane %v1219_v40, 2 }
 0x18a   : > { %v523_v42 = vld [vmem:[#allocation3] sm:$0xff] }
 0x18b   : > { %v1224_v43 = vld [vmem:[#allocation2 + $0x18] sm:$0xff]  ;;  %v541_v44 = vadd.f32 %v533_v41, %v523_v42  ;;  %v639_v41 = vadd.f32 1.0, %v834_v32 }
 0x18c   : > { %522 = vst.msk [vmem:[#allocation3 + $0x18] sm:$0xff] %vm216_vm0, %v1224_v43  ;;  %v535_v45 = vrot.slane %v1224_v43, 1  ;;  %v570_v22 = vrot.slane %v1224_v43, 2 }
 0x18d   : > { %545 = vst.msk [vmem:[#allocation3] sm:$0xff] %vm216_vm0, %v541_v44  ;;  %841 = vlog2.f32 %v639_v41 }
 0x18e   : > { %v524_v47 = vld [vmem:[#allocation3 + $0x8] sm:$0x7f]  ;;  %v536_v52 = vsel %vm323_vm3, %v534_v46, %v535_v45  ;;  %v571_v29 = vsel %vm565_vm7, %v569_v28, %v570_v22 }
 0x18f   : > { %v542_v49 = vadd.f32 %v532_v39, %v524_v47  ;;  %v836_v39 = vpop.eup %835 }
 0x190   : > { %v525_v51 = vld [vmem:[#allocation3 + $0x10] sm:$0xff] }
 0x191   : > { %v543_v53 = vadd.f32 %v536_v52, %v525_v51  ;;  %546 = vst.msk [vmem:[#allocation3 + $0x8] sm:$0x7f] %vm339_vm4, %v542_v49  ;;  %v613_v49 = vmul.f32 %v1084_v1, %v1232_v48  ;;  %v838_v51 = vpop.eup %837  ;;  %v614_v52 = vmul.f32 %v1106_v3, %v1235_v50 }
 0x192   : > { %v642_v62 = vmul.f32 0.6931472, %v838_v51 }
 0x193   : > { %v526_v57 = vld [vmem:[#allocation3 + $0x18] sm:$0x7f]  ;;  %547 = vst.msk [vmem:[#allocation3 + $0x10] sm:$0xff] %vm216_vm0, %v543_v53  ;;  %v609_v53 = vmax.f32 %v1232_v48, 0.0  ;;  %v618_v48 = vsub.f32 %v610_v54, %v614_v52 }
 0x194   : > { %v544_v58 = vadd.f32 %v535_v45, %v526_v57  ;;  %v640_v45 = vadd.f32 1.0, %v836_v39 }
 0x195   : > { %v617_v61 = vsub.f32 %v609_v53, %v613_v49 }
 0x196   : > { %548 = vst.msk [vmem:[#allocation3 + $0x18] sm:$0x7f] %vm339_vm4, %v544_v58  ;;  %843 = vlog2.f32 %v640_v45  ;;  %v615_v58 = vmul.f32 %v1082_v0, %v1241_v55 }
 0x197   : > { %v649_v8 = vadd.f32 %v642_v62, %v617_v61 }
 0x198   : > { %v549_v63 = vld [vmem:[#allocation3 + $0x1] sm:$0xff]  ;;  %v550_v4 = vld [vmem:[#allocation3 + $0x9] sm:$0x7f]  ;;  %v619_v0 = vsub.f32 %v611_v60, %v615_v58 }
 0x199   : > { %v553_v6 = vadd.f32 %v549_v63, %v1208_v36  ;;  %v554_v7 = vadd.f32 %v550_v4, %v1213_v37  ;;  %v612_v63 = vmax.f32 %v1246_v59, 0.0 }
 0x19b   : > { %557 = vst.msk [vmem:[#allocation3 + $0x1] sm:$0xff] %vm216_vm0, %v553_v6 }
 0x19c   : > { %558 = vst.msk [vmem:[#allocation3 + $0x9] sm:$0x7f] %vm339_vm4, %v554_v7 }
 0x19d   : > { %v551_v12 = vld [vmem:[#allocation3 + $0x11] sm:$0xff]  ;;  %v552_v14 = vld [vmem:[#allocation3 + $0x19] sm:$0x7f] }
 0x19e   : > { %v555_v15 = vadd.f32 %v551_v12, %v1219_v40  ;;  %v556_v16 = vadd.f32 %v552_v14, %v1224_v43 }
 0x1a0   : > { %559 = vst.msk [vmem:[#allocation3 + $0x11] sm:$0xff] %vm216_vm0, %v555_v15 }
 0x1a1   : > { %560 = vst.msk [vmem:[#allocation3 + $0x19] sm:$0x7f] %vm339_vm4, %v556_v16 }
 0x1a2   : > { %v561_v21 = vld [vmem:[#allocation3] sm:$0xff] }
 0x1a3   : > { %v562_v23 = vld [vmem:[#allocation3 + $0x8] sm:$0x3f]  ;;  %v576_v24 = vadd.f32 %v568_v20, %v561_v21 }
 0x1a4   : > { %v577_v26 = vadd.f32 %v567_v13, %v562_v23 }
 0x1a5   : > { %580 = vst.msk [vmem:[#allocation3] sm:$0xff] %vm216_vm0, %v576_v24 }
 0x1a6   : > { %582 = vst.msk [vmem:[#allocation3 + $0x8] sm:$0x3f] %vm581_vm8, %v577_v26 }
 0x1a7   : > { %v563_v30 = vld [vmem:[#allocation3 + $0x10] sm:$0xff] }
 0x1a8   : > { %v564_v33 = vld [vmem:[#allocation3 + $0x18] sm:$0x3f]  ;;  %v578_v34 = vadd.f32 %v571_v29, %v563_v30 }
 0x1a9   : > { %v579_v38 = vadd.f32 %v570_v22, %v564_v33 }
 0x1aa   : > { %583 = vst.msk [vmem:[#allocation3 + $0x10] sm:$0xff] %vm216_vm0, %v578_v34 }
 0x1ab   : > { %584 = vst.msk [vmem:[#allocation3 + $0x18] sm:$0x3f] %vm581_vm8, %v579_v38 }
 0x1ad   : > { %v586_v42 = vld [vmem:[#allocation3 + $0xa] sm:$0x3f]  ;;  %v585_v44 = vld [vmem:[#allocation3 + $0x2] sm:$0xff] }
 0x1ae   : > { %v590_v46 = vadd.f32 %v586_v42, %v1213_v37  ;;  %v589_v47 = vadd.f32 %v585_v44, %v1208_v36  ;;  %v840_v37 = vpop.eup %839 }
 0x1af   : > { %v842_v3 = vpop.eup %841  ;;  %v644_v50 = vmul.f32 0.6931472, %v840_v37 }
 0x1b0   : > { %594 = vst.msk [vmem:[#allocation3 + $0xa] sm:$0x3f] %vm581_vm8, %v590_v46  ;;  %v646_v6 = vmul.f32 0.6931472, %v842_v3 }
 0x1b1   : > { %593 = vst.msk [vmem:[#allocation3 + $0x2] sm:$0xff] %vm216_vm0, %v589_v47  ;;  %v650_v9 = vadd.f32 %v644_v50, %v618_v48 }
 0x1b2   : > { %v587_v56 = vld [vmem:[#allocation3 + $0x12] sm:$0xff]  ;;  %v588_v36 = vld [vmem:[#allocation3 + $0x1a] sm:$0x3f]  ;;  %v651_v17 = vadd.f32 %v646_v6, %v619_v0 }
 0x1b3   : > { %v591_v57 = vadd.f32 %v587_v56, %v1219_v40  ;;  %v592_v1 = vadd.f32 %v588_v36, %v1224_v43  ;;  %v616_v40 = vmul.f32 %v1100_v2, %v1246_v59  ;;  %v844_v43 = vpop.eup %843 }
 0x1b4   : > { %v648_v11 = vmul.f32 0.6931472, %v844_v43 }
 0x1b5   : > { %595 = vst.msk [vmem:[#allocation3 + $0x12] sm:$0xff] %vm216_vm0, %v591_v57  ;;  %v620_v10 = vsub.f32 %v612_v63, %v616_v40 }
 0x1b6   : > { %596 = vst.msk [vmem:[#allocation3 + $0x1a] sm:$0x3f] %vm581_vm8, %v592_v1 }
 0x1b7   : > { %v652_v59 = vadd.f32 %v648_v11, %v620_v10 }
 0x1b8   : > { %v597_v4 = vld [vmem:[#allocation3] sm:$0xff]  ;;  %v598_v5 = vld [vmem:[#allocation3 + $0x8] sm:$0xff] }
 0x1b9   : > { %v601_v55 = vmul.f32 0.4, %v597_v4  ;;  %v602_v7 = vmul.f32 0.4, %v598_v5 }
 0x1bb   : > { %v605_v12 = vadd.f32 1.0, %v601_v55  ;;  %v606_v13 = vadd.f32 1.0, %v602_v7 }
 0x1bc   : > { %v599_v14 = vld [vmem:[#allocation3 + $0x10] sm:$0xff] }
 0x1bd   : > { %v600_v15 = vld [vmem:[#allocation3 + $0x18] sm:$0xff]  ;;  %v603_v16 = vmul.f32 0.4, %v599_v14  ;;  %v653_v18 = vmul.f32 %v649_v8, %v605_v12  ;;  %v654_v19 = vmul.f32 %v650_v9, %v606_v13 }
 0x1be   : > { %v604_v2 = vmul.f32 0.4, %v600_v15 }
 0x1bf   : > { %v607_v20 = vadd.f32 1.0, %v603_v16  ;;  %v657_v21 = vsel %vm216_vm0, %v653_v18, 0.0  ;;  %v658_v22 = vsel %vm216_vm0, %v654_v19, 0.0 }
 0x1c0   : > { %v608_v23 = vadd.f32 1.0, %v604_v2  ;;  %v659_v24 = vadd.f32 %v658_v22, %v657_v21 }
 0x1c1   : > { %v655_v25 = vmul.f32 %v651_v17, %v607_v20 }
 0x1c2   : > { %v656_v26 = vmul.f32 %v652_v59, %v608_v23 }
 0x1c3   : > { %v660_v27 = vsel %vm216_vm0, %v655_v25, 0.0 }
 0x1c4   : > { %v661_v28 = vadd.f32 %v660_v27, %v659_v24  ;;  %v662_v29 = vsel %vm216_vm0, %v656_v26, 0.0 }
 0x1c6   : > { %v663_v30 = vadd.f32 %v662_v29, %v661_v28 }
 0x1c8   : > { %664 = vadd.xlane.f32.xlu0 %v663_v30 }
 0x23b   : > { %v665_v31 = vpop.xlane.xlu0 %664 }
 0x23c   : > { %v666_v32 = vrot.slane %v665_v31, 4 }
 0x23e   : > { %v667_v33 = vadd.f32 %v666_v32, %v665_v31 }
 0x240   : > { %v668_v34 = vrot.slane %v667_v33, 2 }
 0x242   : > { %v669_v35 = vadd.f32 %v668_v34, %v667_v33 }
 0x244   : > { %v670_v38 = vrot.slane %v669_v35, 1 }
 0x246   : > { %v671_v39 = vadd.f32 %v670_v38, %v669_v35 }
 0x248   : > { %777 = vpush %v671_v39 }
 0x279   : > { %s778_s3 = spop %777 }
 0x27a   : > { %v673_v41 = vstv %s778_s3 }
 0x27b   : > { %674 = vst [vmem:[%s207_s26] sm:$0x1] %v673_v41 }
 0x27c PF: > { %p15_p8 = scmp.ge.s32.totalorder %s988_s14, 6   ;;  %s1318_s9 = smov %s935_s10 }
 0x27d   : > { %s1319_s10 = smov %s939_s11  ;;  %s1320_s11 = smov %s998_s17 }
 0x27e   : > { %s1321_s12 = smov %s988_s14  ;;  %17 = sbr.rel (!%p15_p8) target bundleno = 5 (0x5), region = 81 }
 0x283   :  { %692 = vsyncpa [#allocation5], 1 }
 0x284   :  { %694 = vsyncpa [#allocation5 + $0x1], 1 }
 0x285   :  { %695 = vsyncpa [#allocation7], 1 }
 0x286   :  { %697 = vsyncpa [#allocation7 + $0x1], 1 }

</bundles_post_ra>
